<compile_context>
chip_gen: v7x
topology: tpu7x:2x2x1
jax: 0.10.0
libtpu: 0.0.40
codegen_flags: <defaults>
</compile_context>

<pallas_src>
import math

import jax
import jax.numpy as jnp
from jax import lax
from jax.experimental import pallas as pl
from jax.experimental.pallas import tpu as pltpu

_INV_SQRT2 = 1.0 / math.sqrt(2.0)


def _round_up(x, m):
    return ((x + m - 1) // m) * m


def _attn_tile(x, w, mask, rep_ref, scores_ref):
    """x: (TB, Sp, Hp) f32; w: (1, Hp); mask: (TB, Sp) or None."""
    # scores = GELU(x @ w): VPU multiply + XLU lane reduce (avoids the (H,1)
    # MXU matvec and the (TB,Sp,1)->(TB,Sp) squeeze relayout).
    s = jnp.sum(x * w, axis=-1)                                   # (TB, Sp)
    s = 0.5 * s * (1.0 + lax.erf(s * _INV_SQRT2))                 # exact GELU
    if mask is not None:
        s = s + mask

    # Softmax over the sequence axis.
    m = jnp.max(s, axis=-1, keepdims=True)
    e = jnp.exp(s - m)
    denom = jnp.sum(e, axis=-1, keepdims=True)
    inv = pl.reciprocal(denom, approx=True)                       # EUP vrcp
    inv = inv * (2.0 - denom * inv)                               # Newton step -> full f32
    sm = e * inv                                                  # (TB, Sp)
    scores_ref[...] = sm.astype(scores_ref.dtype)

    # representations = sum_s sm[b, s] * x[b, s, :] as a batched contraction
    # over S (no (TB, Sp, Hp) temporary, no lane broadcast of sm across H).
    rep = jnp.einsum(
        "bqs,bsh->bqh", sm[:, None, :], x,
        preferred_element_type=jnp.float32,
    )[:, 0, :]                                                    # (TB, Hp)
    rep_ref[...] = rep.astype(rep_ref.dtype)


def _kernel_nomask(x_ref, w_ref, rep_ref, scores_ref):
    _attn_tile(x_ref[...], w_ref[...], None, rep_ref, scores_ref)


def _kernel_masked(x_ref, w_ref, mask_ref, rep_ref, scores_ref):
    _attn_tile(x_ref[...], w_ref[...], mask_ref[...], rep_ref, scores_ref)


def _pick_batch_tile(B, Sp, Hp, itemsize, dbuf_budget_bytes=8 * 1024 * 1024):
    # Size the batch tile so the double-buffered (TB, Sp, Hp) input block stays
    # inside a conservative budget that fits the default scoped VMEM limits of
    # every generation (16 MiB v5e, 32 MiB v6e/v7x; 64 MiB physical on v7x).
    bytes_per_row = 2 * Sp * Hp * itemsize
    tb = max(1, dbuf_budget_bytes // bytes_per_row)
    tb = min(tb, B)
    tb = max(8, (tb // 8) * 8)      # multiple of 8 sublanes for the 2D outputs
    return int(tb)


def average_self_attention(inputs, attention_weights, attention_mask=None):
    """inputs: (B, S, H); attention_weights: (H,); attention_mask: None or (B, S)."""
    B, S, H = inputs.shape
    dtype = inputs.dtype
    itemsize = jnp.dtype(dtype).itemsize

    Sp = _round_up(S, 8)        # sublane-aligned sequence
    Hp = _round_up(H, 128)      # lane-dense hidden
    TB = _pick_batch_tile(B, Sp, Hp, itemsize)
    Bp = _round_up(B, TB)

    x = inputs
    if (Bp, Sp, Hp) != (B, S, H):
        x = jnp.pad(x, ((0, Bp - B), (0, Sp - S), (0, Hp - H)))
    w = attention_weights.astype(dtype)
    if Hp != H:
        w = jnp.pad(w, (0, Hp - H))
    w = w.reshape(1, Hp)

    with_mask = (attention_mask is not None) or (Sp != S)
    args = [x, w]
    if with_mask:
        mask = (attention_mask.astype(dtype) if attention_mask is not None
                else jnp.zeros((B, S), dtype=dtype))
        mask = jnp.pad(mask, ((0, Bp - B), (0, 0)))
        if Sp != S:
            # Padded sequence positions get a large negative bias so they take
            # zero softmax weight.
            mask = jnp.concatenate(
                [mask, jnp.full((Bp, Sp - S), -1e30, dtype=dtype)], axis=1)
        args.append(mask)

    grid = (Bp // TB,)
    in_specs = [
        pl.BlockSpec((TB, Sp, Hp), lambda b: (b, 0, 0)),
        pl.BlockSpec((1, Hp), lambda b: (0, 0)),
    ]
    if with_mask:
        in_specs.append(pl.BlockSpec((TB, Sp), lambda b: (b, 0)))

    rep, scores = pl.pallas_call(
        _kernel_masked if with_mask else _kernel_nomask,
        grid=grid,
        in_specs=in_specs,
        out_specs=(
            pl.BlockSpec((TB, Hp), lambda b: (b, 0)),
            pl.BlockSpec((TB, Sp), lambda b: (b, 0)),
        ),
        out_shape=(
            jax.ShapeDtypeStruct((Bp, Hp), dtype),
            jax.ShapeDtypeStruct((Bp, Sp), dtype),
        ),
        compiler_params=pltpu.CompilerParams(
            dimension_semantics=("parallel",),   # v7x: shard batch over both TCs
            vmem_limit_bytes=32 * 1024 * 1024,
        ),
    )(*args)

    return rep[:B, :H], scores[:B, :S]


def _reference(inputs, w, attention_mask=None):
    s = jnp.einsum("bsh,h->bs", inputs, w)
    s = 0.5 * s * (1.0 + lax.erf(s / jnp.sqrt(2.0)))
    if attention_mask is not None:
        s = s + attention_mask
    s = jax.nn.softmax(s, axis=-1)
    rep = jnp.sum(inputs * s[:, :, None], axis=1)
    return rep, s


def _check(rep, scores, rep_ref, scores_ref):
    assert rep.shape == rep_ref.shape and scores.shape == scores_ref.shape
    assert jnp.allclose(rep, rep_ref, atol=1e-5, rtol=1e-4), (
        float(jnp.max(jnp.abs(rep - rep_ref))))
    assert jnp.allclose(scores, scores_ref, atol=1e-5, rtol=1e-4), (
        float(jnp.max(jnp.abs(scores - scores_ref))))


if __name__ == "__main__":
    key = jax.random.PRNGKey(0)
    k_in, k_w, k_m = jax.random.split(key, 3)

    B, S, H = 2, 8, 32  # batch, seq, attention_size
    inputs = jax.random.normal(k_in, (B, S, H), dtype=jnp.float32)
    # nn.init.normal_(w, std=0.02)
    attention_weights = 0.02 * jax.random.normal(k_w, (H,), dtype=jnp.float32)

    # 1) no attention_mask (mask-free kernel variant)
    rep, scores = average_self_attention(inputs, attention_weights)
    rep = jax.block_until_ready(rep)
    scores = jax.block_until_ready(scores)
    assert rep.shape == (B, H) and scores.shape == (B, S)
    _check(rep, scores, *_reference(inputs, attention_weights))

    # 2) with an additive attention_mask (masked kernel variant)
    mask = jax.random.normal(k_m, (B, S), dtype=jnp.float32)
    rep_m, scores_m = average_self_attention(inputs, attention_weights, mask)
    rep_m = jax.block_until_ready(rep_m)
    _check(rep_m, scores_m, *_reference(inputs, attention_weights, mask))

    # 3) odd shapes exercising the batch / sequence / hidden padding paths
    B2, S2, H2 = 3, 12, 20
    k2_in, k2_w = jax.random.split(jax.random.PRNGKey(1))
    inputs2 = jax.random.normal(k2_in, (B2, S2, H2), dtype=jnp.float32)
    w2 = 0.02 * jax.random.normal(k2_w, (H2,), dtype=jnp.float32)
    rep2, scores2 = average_self_attention(inputs2, w2)
    rep2 = jax.block_until_ready(rep2)
    _check(rep2, scores2, *_reference(inputs2, w2))

    print("KERNEL_OK")
</pallas_src>

<mosaic_0001>
module attributes {stable_mosaic.version = 11 : i64} {
  func.func @_kernel_nomask(%arg0: i32, %arg1: memref<8x8x128xf32, #tpu.memory_space<vmem>>, %arg2: memref<1x128xf32, #tpu.memory_space<vmem>>, %arg3: memref<8x128xf32, #tpu.memory_space<vmem>>, %arg4: memref<8x8xf32, #tpu.memory_space<vmem>>) attributes {dimension_semantics = [#tpu.dimension_semantics<parallel>], iteration_bounds = array<i64: 1>, scalar_prefetch = 0 : i64, scratch_operands = 0 : i64, tpu.core_type = #tpu.core_type<tc>, window_params = [{transform_indices = @transform_0, window_bounds = array<i64: 8, 8, 128>}, {pipeline_mode = #tpu.pipeline_mode<synchronous>, transform_indices = @transform_1, window_bounds = array<i64: 1, 128>}, {transform_indices = @transform_2, window_bounds = array<i64: 8, 128>}, {transform_indices = @transform_3, window_bounds = array<i64: 8, 8>}]} {
    %c0 = arith.constant 0 : index
    %c0_0 = arith.constant 0 : index
    %c0_1 = arith.constant 0 : index
    %0 = vector.load %arg1[%c0, %c0_0, %c0_1] : memref<8x8x128xf32, #tpu.memory_space<vmem>>, vector<8x8x128xf32>
    %c0_2 = arith.constant 0 : index
    %c0_3 = arith.constant 0 : index
    %1 = vector.load %arg2[%c0_2, %c0_3] : memref<1x128xf32, #tpu.memory_space<vmem>>, vector<1x128xf32>
    %2 = vector.shape_cast %1 : vector<1x128xf32> to vector<1x1x128xf32>
    %3 = vector.broadcast %2 : vector<1x1x128xf32> to vector<8x8x128xf32>
    %4 = arith.mulf %0, %3 : vector<8x8x128xf32>
    %cst = arith.constant dense<0.000000e+00> : vector<8x8xf32>
    %5 = vector.multi_reduction <add>, %4, %cst [2] : vector<8x8x128xf32> to vector<8x8xf32>
    %cst_4 = arith.constant 5.000000e-01 : f32
    %6 = vector.broadcast %cst_4 : f32 to vector<8x8xf32>
    %7 = arith.mulf %6, %5 : vector<8x8xf32>
    %cst_5 = arith.constant 0.707106769 : f32
    %8 = vector.broadcast %cst_5 : f32 to vector<8x8xf32>
    %9 = arith.mulf %5, %8 : vector<8x8xf32>
    %10 = math.erf %9 : vector<8x8xf32>
    %cst_6 = arith.constant 1.000000e+00 : f32
    %11 = vector.broadcast %cst_6 : f32 to vector<8x8xf32>
    %12 = arith.addf %11, %10 : vector<8x8xf32>
    %13 = arith.mulf %7, %12 : vector<8x8xf32>
    %cst_7 = arith.constant dense<0xFF800000> : vector<8xf32>
    %14 = vector.multi_reduction <maximumf>, %13, %cst_7 [1] : vector<8x8xf32> to vector<8xf32>
    %15 = vector.shape_cast %14 : vector<8xf32> to vector<8x1xf32>
    %16 = vector.broadcast %15 : vector<8x1xf32> to vector<8x8xf32>
    %17 = arith.subf %13, %16 : vector<8x8xf32>
    %18 = math.exp %17 : vector<8x8xf32>
    %cst_8 = arith.constant dense<0.000000e+00> : vector<8xf32>
    %19 = vector.multi_reduction <add>, %18, %cst_8 [1] : vector<8x8xf32> to vector<8xf32>
    %20 = vector.shape_cast %19 : vector<8xf32> to vector<8x1xf32>
    %21 = tpu.reciprocal %20 {approx = true} : vector<8x1xf32> -> vector<8x1xf32>
    %22 = arith.mulf %20, %21 : vector<8x1xf32>
    %cst_9 = arith.constant 2.000000e+00 : f32
    %23 = vector.broadcast %cst_9 : f32 to vector<8x1xf32>
    %24 = arith.subf %23, %22 : vector<8x1xf32>
    %25 = arith.mulf %21, %24 : vector<8x1xf32>
    %26 = vector.broadcast %25 : vector<8x1xf32> to vector<8x8xf32>
    %27 = arith.mulf %18, %26 : vector<8x8xf32>
    %c0_10 = arith.constant 0 : index
    %c0_11 = arith.constant 0 : index
    %28 = vector.load %arg4[%c0_10, %c0_11] : memref<8x8xf32, #tpu.memory_space<vmem>>, vector<8x8xf32>
    tpu.vector_store %arg4[%c0_10, %c0_11], %27 {strides = array<i32>} : memref<8x8xf32, #tpu.memory_space<vmem>>, vector<8x8xf32>,
    %29 = vector.shape_cast %27 : vector<8x8xf32> to vector<8x1x8xf32>
    "tpu.trace_start"() <{level = 10 : i32, message = "bqs,bsh->bqh"}> : () -> ()
    %cst_12 = arith.constant dense<0.000000e+00> : vector<8x1x128xf32>
    %30 = tpu.matmul %29, %0, %cst_12 {dimension_numbers = #tpu.dot_dimension_numbers<[2], [1], [1], [2], [0, 0, 0, 1, 1, 2], [0], [0]>} : vector<8x1x8xf32>, vector<8x8x128xf32>, vector<8x1x128xf32> -> vector<8x1x128xf32>
    "tpu.trace_stop"() : () -> ()
    %31 = vector.shape_cast %30 : vector<8x1x128xf32> to vector<8x128xf32>
    %c0_13 = arith.constant 0 : index
    %c0_14 = arith.constant 0 : index
    %32 = vector.load %arg3[%c0_13, %c0_14] : memref<8x128xf32, #tpu.memory_space<vmem>>, vector<8x128xf32>
    tpu.vector_store %arg3[%c0_13, %c0_14], %31 {strides = array<i32>} : memref<8x128xf32, #tpu.memory_space<vmem>>, vector<8x128xf32>,
    return
  }
  func.func @transform_0(%arg0: i32) -> (i32, i32, i32) {
    %c0_i32 = arith.constant 0 : i32
    %c0_i32_0 = arith.constant 0 : i32
    %c0_i32_1 = arith.constant 0 : i32
    return %arg0, %c0_i32, %c0_i32_0 : i32, i32, i32
  }
  func.func @transform_1(%arg0: i32) -> (i32, i32) {
    %c0_i32 = arith.constant 0 : i32
    %c0_i32_0 = arith.constant 0 : i32
    %c0_i32_1 = arith.constant 0 : i32
    return %c0_i32, %c0_i32_0 : i32, i32
  }
  func.func @transform_2(%arg0: i32) -> (i32, i32) {
    %c0_i32 = arith.constant 0 : i32
    %c0_i32_0 = arith.constant 0 : i32
    return %arg0, %c0_i32 : i32, i32
  }
  func.func @transform_3(%arg0: i32) -> (i32, i32) {
    %c0_i32 = arith.constant 0 : i32
    %c0_i32_0 = arith.constant 0 : i32
    return %arg0, %c0_i32 : i32, i32
  }
}

</mosaic_0001>

<bundles_post_ra>
// kernel: tpu_custom_call.1
= control target key start
LH: loop header
LB: loop body
LE: loop exit
PB: predicated region body
PF: predicated region fallthrough
CT: control target
= control target key end

     0   :  { %9 = vsyncpa [#allocation3], 0  ;;  %s1524_s0 = inlined_call_operand.hbm [shape: f32[8,8,128], index: 0, kind: input, shape index: {}]   ;;  %s1525_s1 = inlined_call_operand.vmem [shape: f32[1,128], index: 1, kind: input, shape index: {}]   ;;  %s1526_s2 = inlined_call_operand.hbm [shape: f32[8,128], index: 2, kind: output, shape index: {0}]   ;;  %s1527_s3 = inlined_call_operand.hbm [shape: f32[8,8], index: 3, kind: output, shape index: {1}]  }
   0x1   :  { %10 = vsyncpa [#allocation4], 0 }
   0x2   :  { %11 = vsyncpa [#allocation7], 0  ;;  %s1245_s12 = smov [#allocation2]   ;;  %s1173_s16 = scalar_lea.hbm %s1524_s0, 1024 }
   0x3   :  { %s17_s13 = sshll.u32 %s1245_s12, 4  ;;  %p1174_p0 = scmp.ne.s32.totalorder %s1524_s0, %s1173_s16  ;;  %s18_s13 = int_to_ptr.vmem [resolvable:$true] %s17_s13 }
   0x4   :  { %p1177_p1 = scmp.lt.u32.totalorder %s1173_s16, %s1524_s0 }
   0x6   :  { %p1179_p2 = pnand %p1177_p1, %p1174_p0 }
   0x8   :  { %1182 = shalt.err (!%p1179_p2)
}
   0x9   :  { %s1183_s21 = scalar_lea.vmem %s18_s13, 1024  ;;  %p1188_p4 = scmp.lt.s32.totalorder %s18_s13, %s18_s13 }
   0xa   :  { %p1184_p3 = scmp.ne.s32.totalorder %s18_s13, %s1183_s21  ;;  %p1189_p5 = scmp.lt.s32.totalorder %s1183_s21, %s1183_s21 }
   0xc   :  { %p1190_p6 = por %p1189_p5, %p1188_p4 }
   0xe   :  { %p1191_p7 = pnand %p1190_p6, %p1184_p3 }
  0x10   :  { %1194 = shalt.err (!%p1191_p7)
}
  0x11   :  { %s1246_s22 = smov 128   ;;  %s1247_s23 = smov 8  }
  0x12   :  { %23 = dma.hbm_to_vmem [thread:$0]  %s1524_s0, 1024, %s18_s13, [#allocation3], %s1246_s22, %s1246_s22, %s1247_s23  }
  0x13   :  { %1239 = dma.done.wait [#allocation3], 1024  }
  0x14   :  { %1240 = vsyncadd [#allocation3], 4294966272  ;;  %v1285_v0 = vld [vmem:[#allocation2 + $0x10] sm:$0xff]  ;;  %v1064_v1 = vld [vmem:[%s1525_s1] ss:$0 sm:$0xff]  ;;  %v116_v29 = vlaneseq  ;;  %vm150_vm0 = vcmask 1041409  }
  0x15   :  { %v1290_v2 = vld [vmem:[#allocation2] sm:$0xff]  ;;  %v46_v3 = vmul.f32 %v1064_v1, %v1285_v0  ;;  %v1294_v5 = vld [vmem:[#allocation2 + $0x18] sm:$0xff]  ;;  %v1296_v6 = vld [vmem:[#allocation2 + $0x8] sm:$0xff]  ;;  %vm152_vm1 = vcmask 1042434   ;;  %vm154_vm2 = vcmask 1043459   ;;  %vm156_vm3 = vcmask 1044484  }
  0x16   :  { %v44_v4 = vmul.f32 %v1064_v1, %v1290_v2  ;;  %v47_v7 = vmul.f32 %v1064_v1, %v1294_v5  ;;  %v45_v8 = vmul.f32 %v1064_v1, %v1296_v6  ;;  %v1300_v9 = vld [vmem:[#allocation2 + $0x28] sm:$0xff]  ;;  %v1302_v10 = vld [vmem:[#allocation2 + $0x20] sm:$0xff]  ;;  %v1306_v13 = vld [vmem:[#allocation2 + $0x38] sm:$0xff]  ;;  %v117_v36 = vand.u32 127, %v116_v29  ;;  %s1251_s0 = smov [#allocation6]  }
  0x17   :  { %56 = vadd.xlane.f32.xlu1 %v46_v3  ;;  %v49_v11 = vmul.f32 %v1064_v1, %v1300_v9  ;;  %v48_v12 = vmul.f32 %v1064_v1, %v1302_v10  ;;  %v1308_v14 = vld [vmem:[#allocation2 + $0x30] sm:$0xff]  ;;  %v51_v15 = vmul.f32 %v1064_v1, %v1306_v13  ;;  %v1312_v37 = vshrl.u32 %v116_v29, 7  ;;  %s1051_s1 = sshll.u32 %s1251_s0, 4  ;;  %s1052_s1 = int_to_ptr.vmem [resolvable:$true] %s1051_s1 }
  0x18   :  { %52 = vadd.xlane.f32.xlu0 %v44_v4  ;;  %v50_v16 = vmul.f32 %v1064_v1, %v1308_v14  ;;  %vm158_vm4 = vcmask 1045509   ;;  %vm160_vm5 = vcmask 1046534   ;;  %vm162_vm6 = vcmask 1047559   ;;  %s1195_s28 = scalar_lea.vmem %s1052_s1, 128  ;;  %p1200_p9 = scmp.lt.s32.totalorder %s1052_s1, %s1052_s1 }
  0x19   :  { %v1315_v43 = vsub.s32 %v117_v36, %v1312_v37  ;;  %vm165_vm7 = vcmask 64512   ;;  %v1248_v29 = vmov 0   ;;  %vm1250_vm8 = vmmov 0   ;;  %p1196_p8 = scmp.ne.s32.totalorder %s1052_s1, %s1195_s28  ;;  %p1201_p10 = scmp.lt.s32.totalorder %s1195_s28, %s1195_s28 }
  0x1a   :  { %1138 = vset.pattern.permute.xlu0 %v1248_v29  ;;  %1137 = vset.pattern.permute.xlu1 %v1248_v29 }
  0x1b   :  { %58 = vadd.xlane.f32.xlu1 %v47_v7  ;;  %p1202_p11 = por %p1201_p10, %p1200_p9 }
  0x1c   :  { %54 = vadd.xlane.f32.xlu0 %v45_v8 }
  0x1d   :  { %p1203_p12 = pnand %p1202_p11, %p1196_p8 }
  0x1f   :  { %62 = vadd.xlane.f32.xlu1 %v49_v11 }
  0x20   :  { %60 = vadd.xlane.f32.xlu0 %v48_v12 }
  0x23   :  { %66 = vadd.xlane.f32.xlu1 %v51_v15 }
  0x24   :  { %64 = vadd.xlane.f32.xlu0 %v50_v16 }
  0xa4   :  { %v57_v17 = vpop.xlane.xlu1 %56 }
  0xa5   :  { %v53_v18 = vpop.xlane.xlu0 %52  ;;  %v78_v19 = vmul.f32 0.70710677, %v57_v17  ;;  %v70_v44 = vmul.f32 0.5, %v57_v17 }
  0xa6   :  { %v76_v20 = vmul.f32 0.70710677, %v53_v18  ;;  %v68_v41 = vmul.f32 0.5, %v53_v18 }
  0xa7   :  { %1139 = verf.f32 %v78_v19 }
  0xa8   :  { %1141 = verf.f32 %v76_v20  ;;  %v59_v21 = vpop.xlane.xlu1 %58 }
  0xa9   :  { %v55_v22 = vpop.xlane.xlu0 %54  ;;  %v79_v23 = vmul.f32 0.70710677, %v59_v21  ;;  %v71_v47 = vmul.f32 0.5, %v59_v21 }
  0xaa   :  { %v77_v24 = vmul.f32 0.70710677, %v55_v22  ;;  %v69_v48 = vmul.f32 0.5, %v55_v22 }
  0xab   :  { %1143 = verf.f32 %v79_v23 }
  0xac   :  { %1145 = verf.f32 %v77_v24  ;;  %v63_v25 = vpop.xlane.xlu1 %62 }
  0xad   :  { %v61_v26 = vpop.xlane.xlu0 %60  ;;  %v81_v27 = vmul.f32 0.70710677, %v63_v25  ;;  %v73_v55 = vmul.f32 0.5, %v63_v25 }
  0xae   :  { %v80_v28 = vmul.f32 0.70710677, %v61_v26  ;;  %v72_v59 = vmul.f32 0.5, %v61_v26 }
  0xaf   :  { %1147 = verf.f32 %v81_v27 }
  0xb0   :  { %1149 = verf.f32 %v80_v28  ;;  %v67_v30 = vpop.xlane.xlu1 %66 }
  0xb1   :  { %v65_v31 = vpop.xlane.xlu0 %64  ;;  %v1140_v32 = vpop.eup %1139  ;;  %v83_v33 = vmul.f32 0.70710677, %v67_v30  ;;  %v75_v11 = vmul.f32 0.5, %v67_v30  ;;  %v172_v30 = vsub.s32 0, %v1312_v37 }
  0xb2   :  { %v82_v34 = vmul.f32 0.70710677, %v65_v31  ;;  %v1142_v35 = vpop.eup %1141  ;;  %v94_v39 = vadd.f32 1.0, %v1140_v32  ;;  %v74_v16 = vmul.f32 0.5, %v65_v31  ;;  %v176_v31 = vsub.s32 1, %v1312_v37 }
  0xb3   :  { %v92_v38 = vadd.f32 1.0, %v1142_v35  ;;  %1151 = verf.f32 %v83_v33  ;;  %v180_v32 = vsub.s32 2, %v1312_v37  ;;  %v184_v33 = vsub.s32 3, %v1312_v37 }
  0xb4   :  { %1153 = verf.f32 %v82_v34  ;;  %v1319_v50 = vmul.f32 %v94_v39, %v70_v44  ;;  %v188_v39 = vsub.s32 4, %v1312_v37 }
  0xb5   :  { %v1144_v40 = vpop.eup %1143  ;;  %v1317_v46 = vmul.f32 %v92_v38, %v68_v41 }
  0xb6   :  { %v1146_v42 = vpop.eup %1145  ;;  %v95_v45 = vadd.f32 1.0, %v1144_v40  ;;  %v129_v61 = vrot.slane %v1319_v50, %v1315_v43 }
  0xb7   :  { %v93_v49 = vadd.f32 1.0, %v1146_v42  ;;  %v121_v57 = vrot.slane %v1317_v46, %v1315_v43 }
  0xb8   :  { %v1321_v52 = vmul.f32 %v95_v45, %v71_v47 }
  0xb9   :  { %v1148_v51 = vpop.eup %1147  ;;  %v101_v53 = vmul.f32 %v93_v49, %v69_v48  ;;  %v192_v48 = vsub.s32 5, %v1312_v37 }
  0xba   :  { %v1150_v54 = vpop.eup %1149  ;;  %v97_v56 = vadd.f32 1.0, %v1148_v51  ;;  %v133_v1 = vrot.slane %v1321_v52, %v1315_v43 }
  0xbb   :  { %v125_v58 = vrot.slane %v101_v53, %v1315_v43  ;;  %v96_v60 = vadd.f32 1.0, %v1150_v54 }
  0xbc   :  { %v1328_v62 = vmul.f32 %v97_v56, %v73_v55  ;;  %v196_v55 = vsub.s32 6, %v1312_v37  ;;  %v200_v56 = vsub.s32 7, %v1312_v37 }
  0xbd   :  { %v1152_v63 = vpop.eup %1151  ;;  %v151_v3 = vsel %vm150_vm0, %v125_v58, %v121_v57  ;;  %v104_v4 = vmul.f32 %v96_v60, %v72_v59 }
  0xbe   :  { %v1154_v7 = vpop.eup %1153  ;;  %v153_v8 = vsel %vm152_vm1, %v129_v61, %v151_v3  ;;  %v99_v12 = vadd.f32 1.0, %v1152_v63  ;;  %v141_v19 = vrot.slane %v1328_v62, %v1315_v43 }
  0xbf   :  { %v137_v15 = vrot.slane %v104_v4, %v1315_v43  ;;  %v98_v17 = vadd.f32 1.0, %v1154_v7  ;;  %v155_v18 = vsel %vm154_vm2, %v133_v1, %v153_v8 }
  0xc0   :  { %v1338_v20 = vmul.f32 %v99_v12, %v75_v11 }
  0xc1   :  { %v106_v21 = vmul.f32 %v98_v17, %v74_v16  ;;  %v157_v22 = vsel %vm156_vm3, %v137_v15, %v155_v18 }
  0xc2   :  { %v149_v23 = vrot.slane %v1338_v20, %v1315_v43  ;;  %v159_v25 = vsel %vm158_vm4, %v141_v19, %v157_v22 }
  0xc3   :  { %v145_v24 = vrot.slane %v106_v21, %v1315_v43 }
  0xc5   :  { %v161_v26 = vsel %vm160_vm5, %v145_v24, %v159_v25 }
  0xc6   :  { %v163_v27 = vsel %vm162_vm6, %v149_v23, %v161_v26 }
  0xc7   :  { %v166_v28 = vsel %vm165_vm7, %v163_v27, -inf }
  0xc8   :  { %167 = vmax.xlane.f32.xlu0 %v166_v28 }
 0x155   :  { %v168_v34 = vpop.xlane.xlu0 %167 }
 0x156   :  { %v173_v35 = vrot.slane %v168_v34, %v172_v30  ;;  %v177_v36 = vrot.slane %v168_v34, %v176_v31  ;;  %v181_v38 = vrot.slane %v168_v34, %v180_v32  ;;  %v185_v40 = vrot.slane %v168_v34, %v184_v33 }
 0x157   :  { %v189_v49 = vrot.slane %v168_v34, %v188_v39  ;;  %v197_v57 = vrot.slane %v168_v34, %v196_v55  ;;  %v201_v61 = vrot.slane %v168_v34, %v200_v56 }
 0x158   :  { %v210_v41 = vsub.f32 %v1317_v46, %v173_v35  ;;  %v211_v42 = vsub.f32 %v101_v53, %v177_v36  ;;  %v212_v44 = vsub.f32 %v1319_v50, %v181_v38  ;;  %v213_v51 = vsub.f32 %v1321_v52, %v185_v40 }
 0x159   :  { %v193_v46 = vrot.slane %v168_v34, %v192_v48  ;;  %v214_v53 = vsub.f32 %v104_v4, %v189_v49  ;;  %v216_v63 = vsub.f32 %v106_v21, %v197_v57 }
 0x15a   :  { %v218_v45 = vmul.f32 1.442695, %v210_v41  ;;  %v220_v47 = vmul.f32 1.442695, %v211_v42  ;;  %v222_v54 = vmul.f32 1.442695, %v212_v44 }
 0x15b   :  { %v224_v50 = vmul.f32 1.442695, %v213_v51  ;;  %v215_v58 = vsub.f32 %v1328_v62, %v193_v46  ;;  %v226_v52 = vmul.f32 1.442695, %v214_v53  ;;  %v217_v62 = vsub.f32 %v1338_v20, %v201_v61 }
 0x15c   :  { %1155 = vpow2.f32 %v218_v45  ;;  %v230_v4 = vmul.f32 1.442695, %v216_v63  ;;  %v1249_v61 = vmov 0.0  }
 0x15d   :  { %1157 = vpow2.f32 %v220_v47  ;;  %v228_v1 = vmul.f32 1.442695, %v215_v58  ;;  %v232_v8 = vmul.f32 1.442695, %v217_v62  ;;  %1089 = vmatprep.subr.mxu0 %v1249_v61  ;;  %1091 = vmatprep.mubr.msk.f32.mxu0 %vm1250_vm8, %v1249_v61 }
 0x15e   :  { %1159 = vpow2.f32 %v222_v54  ;;  %1090 = vmatpush3.msra.mxu0 %v1290_v2  ;;  %1094 = vmatprep.subr.mxu1 %v1249_v61 }
 0x15f   :  { %1161 = vpow2.f32 %v224_v50  ;;  %1095 = vmatpush3.msra.mxu1 %v1296_v6  ;;  %1096 = vmatprep.mubr.msk.f32.mxu1 %vm1250_vm8, %v1249_v61 }
 0x160   :  { %1163 = vpow2.f32 %v226_v52  ;;  %1099 = vmatprep.subr.mxu0 %v1249_v61  ;;  %1104 = vmatprep.subr.mxu1 %v1249_v61 }
 0x161   :  { %1165 = vpow2.f32 %v228_v1 }
 0x162   :  { %1167 = vpow2.f32 %v230_v4 }
 0x163   :  { %1169 = vpow2.f32 %v232_v8 }
 0x166   :  { %v1156_v59 = vpop.eup %1155 }
 0x167   :  { %v1374_v60 = vpop.eup %1157  ;;  %243 = vperm.xlu1 %1137, %v1156_v59  }
 0x168   :  { %246 = vperm.xlu0 %1138, %v1374_v60   ;;  %v1379_v3 = vpop.eup %1159 }
 0x169   :  { %v1383_v7 = vpop.eup %1161 }
 0x16a   :  { %v1386_v11 = vpop.eup %1163 }
 0x16b   :  { %249 = vperm.xlu1 %1137, %v1379_v3   ;;  %v1389_v12 = vpop.eup %1165 }
 0x16c   :  { %v1392_v15 = vpop.eup %1167 }
 0x16d   :  { %v1395_v16 = vpop.eup %1169 }
 0x16f   :  { %252 = vperm.xlu1 %1137, %v1383_v7  }
 0x173   :  { %255 = vperm.xlu1 %1137, %v1386_v11  }
 0x177   :  { %258 = vperm.xlu1 %1137, %v1389_v12  }
 0x17b   :  { %261 = vperm.xlu1 %1137, %v1392_v15  }
 0x17f   :  { %264 = vperm.xlu1 %1137, %v1395_v16  }
 0x1e6   :  { %v244_v17 = vpop.permute.xlu1 %243 }
 0x1e7   :  { %v247_v21 = vpop.permute.xlu0 %246  ;;  %v269_v24 = vrot.slane %v244_v17, %v1315_v43 }
 0x1e8   :  { %v273_v23 = vrot.slane %v247_v21, %v1315_v43 }
 0x1ea   :  { %v250_v18 = vpop.permute.xlu1 %249  ;;  %v298_v29 = vsel %vm150_vm0, %v273_v23, %v269_v24 }
 0x1eb   :  { %v277_v25 = vrot.slane %v250_v18, %v1315_v43 }
 0x1ed   :  { %v299_v35 = vsel %vm152_vm1, %v277_v25, %v298_v29 }
 0x1ee   :  { %v253_v19 = vpop.permute.xlu1 %252 }
 0x1ef   :  { %v281_v26 = vrot.slane %v253_v19, %v1315_v43 }
 0x1f1   :  { %v300_v38 = vsel %vm154_vm2, %v281_v26, %v299_v35 }
 0x1f2   :  { %v256_v20 = vpop.permute.xlu1 %255 }
 0x1f3   :  { %v285_v27 = vrot.slane %v256_v20, %v1315_v43 }
 0x1f5   :  { %v301_v40 = vsel %vm156_vm3, %v285_v27, %v300_v38 }
 0x1f6   :  { %v259_v22 = vpop.permute.xlu1 %258 }
 0x1f7   :  { %v289_v34 = vrot.slane %v259_v22, %v1315_v43 }
 0x1f9   :  { %v302_v42 = vsel %vm158_vm4, %v289_v34, %v301_v40 }
 0x1fa   :  { %v262_v28 = vpop.permute.xlu1 %261 }
 0x1fb   :  { %v293_v36 = vrot.slane %v262_v28, %v1315_v43 }
 0x1fd   :  { %v303_v45 = vsel %vm160_vm5, %v293_v36, %v302_v42 }
 0x1fe   :  { %v265_v41 = vpop.permute.xlu1 %264 }
 0x1ff   :  { %v297_v44 = vrot.slane %v265_v41, %v1315_v43 }
 0x201   :  { %v304_v47 = vsel %vm162_vm6, %v297_v44, %v303_v45 }
 0x202   :  { %v306_v49 = vsel %vm165_vm7, %v304_v47, 0.0 }
 0x203   :  { %307 = vadd.xlane.f32.xlu1 %v306_v49 }
 0x290   :  { %v308_v51 = vpop.xlane.xlu1 %307 }
 0x291   :  { %1171 = vrcp.f32 %v308_v51 }
 0x29b   :  { %v1172_v54 = vpop.eup %1171 }
 0x29c   :  { %v310_v46 = vmul.f32 %v1172_v54, %v308_v51 }
 0x29e   :  { %v311_v53 = vsub.f32 2.0, %v310_v46 }
 0x2a0   :  { %v312_v50 = vmul.f32 %v1172_v54, %v311_v53 }
 0x2a2   :  { %v317_v57 = vrot.slane %v312_v50, %v172_v30  ;;  %v321_v52 = vrot.slane %v312_v50, %v176_v31  ;;  %v325_v1 = vrot.slane %v312_v50, %v180_v32  ;;  %v329_v31 = vrot.slane %v312_v50, %v184_v33 }
 0x2a3   :  { %v333_v32 = vrot.slane %v312_v50, %v188_v39  ;;  %v345_v62 = vrot.slane %v312_v50, %v200_v56 }
 0x2a4   :  { %v354_v58 = vmul.f32 %v1156_v59, %v317_v57  ;;  %v355_v63 = vmul.f32 %v1374_v60, %v321_v52  ;;  %v356_v30 = vmul.f32 %v1379_v3, %v325_v1  ;;  %v357_v2 = vmul.f32 %v1383_v7, %v329_v31 }
 0x2a5   :  { %v358_v6 = vmul.f32 %v1386_v11, %v333_v32  ;;  %v337_v59 = vrot.slane %v312_v50, %v192_v48  ;;  %v341_v3 = vrot.slane %v312_v50, %v196_v55  ;;  %v361_v39 = vmul.f32 %v1395_v16, %v345_v62 }
 0x2a6   :  { %371 = vperm.xlu0 %1138, %v354_v58  }
 0x2a7   :  { %v359_v60 = vmul.f32 %v1389_v12, %v337_v59  ;;  %v360_v33 = vmul.f32 %v1392_v15, %v341_v3 }
 0x2aa   :  { %374 = vperm.xlu0 %1138, %v355_v63  }
 0x2ae   :  { %377 = vperm.xlu0 %1138, %v356_v30  }
 0x2b2   :  { %380 = vperm.xlu0 %1138, %v357_v2  }
 0x2b6   :  { %383 = vperm.xlu0 %1138, %v358_v6  }
 0x2ba   :  { %386 = vperm.xlu0 %1138, %v359_v60  }
 0x2be   :  { %389 = vperm.xlu0 %1138, %v360_v33  }
 0x2c2   :  { %392 = vperm.xlu0 %1138, %v361_v39  }
 0x325   :  { %v372_v4 = vpop.permute.xlu0 %371 }
 0x326   :  { %v397_v7 = vrot.slane %v372_v4, %v1315_v43 }
 0x328   :  { %1092 = vmatmul.mubr.msk.f32.vlgmr.msra.gmra.mrb[0].mxu0 %vm165_vm7, %v397_v7 }
 0x329   :  { %v375_v48 = vpop.permute.xlu0 %374  ;;  %1100 = vmatpush3.msra.mxu0 %v1285_v0  ;;  %1101 = vmatprep.mubr.msk.f32.mxu0 %vm1250_vm8, %v1249_v61 }
 0x32a   :  { %v401_v55 = vrot.slane %v375_v48, %v1315_v43  ;;  %1109 = vmatprep.subr.mxu0 %v1249_v61 }
 0x32c   :  { %1097 = vmatmul.mubr.msk.f32.vlgmr.msra.gmra.mrb[0].mxu1 %vm165_vm7, %v401_v55  ;;  %v426_v15 = vsel %vm150_vm0, %v401_v55, %v397_v7 }
 0x32d   :  { %v378_v37 = vpop.permute.xlu0 %377  ;;  %1105 = vmatpush3.msra.mxu1 %v1294_v5  ;;  %1106 = vmatprep.mubr.msk.f32.mxu1 %vm1250_vm8, %v1249_v61 }
 0x32e   :  { %v405_v56 = vrot.slane %v378_v37, %v1315_v43  ;;  %1114 = vmatprep.subr.mxu1 %v1249_v61 }
 0x330   :  { %1102 = vmatmul.mubr.msk.f32.vlgmr.msra.gmra.mrb[2].mxu0 %vm165_vm7, %v405_v56  ;;  %v427_v17 = vsel %vm152_vm1, %v405_v56, %v426_v15 }
 0x331   :  { %v381_v0 = vpop.permute.xlu0 %380  ;;  %1110 = vmatpush3.msra.mxu0 %v1302_v10  ;;  %1111 = vmatprep.mubr.msk.f32.mxu0 %vm1250_vm8, %v1249_v61 }
 0x332   :  { %v409_v8 = vrot.slane %v381_v0, %v1315_v43  ;;  %1119 = vmatprep.subr.mxu0 %v1249_v61 }
 0x334   :  { %1107 = vmatmul.mubr.msk.f32.vlgmr.msra.gmra.mrb[2].mxu1 %vm165_vm7, %v409_v8 }
 0x335   :  { %v384_v5 = vpop.permute.xlu0 %383  ;;  %1115 = vmatpush3.msra.mxu1 %v1300_v9  ;;  %1116 = vmatprep.mubr.msk.f32.mxu1 %vm1250_vm8, %v1249_v61 }
 0x336   :  { %v413_v11 = vrot.slane %v384_v5, %v1315_v43  ;;  %1124 = vmatprep.subr.mxu1 %v1249_v61 }
 0x338   :  { %1112 = vmatmul.mubr.msk.f32.vlgmr.msra.gmra.mrb[4].mxu0 %vm165_vm7, %v413_v11 }
 0x339   :  { %v387_v10 = vpop.permute.xlu0 %386  ;;  %1120 = vmatpush3.msra.mxu0 %v1308_v14  ;;  %1121 = vmatprep.mubr.msk.f32.mxu0 %vm1250_vm8, %v1249_v61  ;;  %v428_v14 = vsel %vm154_vm2, %v409_v8, %v427_v17 }
 0x33a   :  { %v417_v12 = vrot.slane %v387_v10, %v1315_v43  ;;  %v429_v18 = vsel %vm156_vm3, %v413_v11, %v428_v14 }
 0x33c   :  { %1117 = vmatmul.mubr.msk.f32.vlgmr.msra.gmra.mrb[4].mxu1 %vm165_vm7, %v417_v12  ;;  %v430_v20 = vsel %vm158_vm4, %v417_v12, %v429_v18 }
 0x33d   :  { %v390_v9 = vpop.permute.xlu0 %389  ;;  %1125 = vmatpush3.msra.mxu1 %v1306_v13  ;;  %1126 = vmatprep.mubr.msk.f32.mxu1 %vm1250_vm8, %v1249_v61 }
 0x33e   :  { %v421_v16 = vrot.slane %v390_v9, %v1315_v43 }
 0x340   :  { %1122 = vmatmul.mubr.msk.f32.vlgmr.msra.gmra.mrb[6].mxu0 %vm165_vm7, %v421_v16  ;;  %v431_v21 = vsel %vm160_vm5, %v421_v16, %v430_v20 }
 0x341   :  { %v393_v19 = vpop.permute.xlu0 %392 }
 0x342   :  { %v425_v13 = vrot.slane %v393_v19, %v1315_v43 }
 0x344   :  { %1127 = vmatmul.mubr.msk.f32.vlgmr.msra.gmra.mrb[6].mxu1 %vm165_vm7, %v425_v13  ;;  %v432_v22 = vsel %vm162_vm6, %v425_v13, %v431_v21 }
 0x345   :  { %434 = vst.msk [vmem:[#allocation6] sm:$0xff] %vm165_vm7, %v432_v22 }
 0x346   :  { %1206 = shalt.err (!%p1203_p12)
}
 0x347   :  { %s1207_s4 = scalar_lea.hbm %s1527_s3, 128 }
 0x348   :  { %p1208_p13 = scmp.ne.s32.totalorder %s1527_s3, %s1207_s4  ;;  %p1211_p0 = scmp.lt.u32.totalorder %s1207_s4, %s1527_s3 }
 0x34a   :  { %p1213_p1 = pnand %p1211_p0, %p1208_p13 }
 0x34c   :  { %1216 = shalt.err (!%p1213_p1)
}
 0x34d   :  { %1054 = dma.vmem_to_hbm [thread:$0]  %s1052_s1, 128, %s1527_s3, [#allocation7]  }
 0x34e   :  { %s1252_s3 = smov [#allocation5]  }
 0x34f   :  { %s1041_s11 = sshll.u32 %s1252_s3, 4  ;;  %s1042_s11 = int_to_ptr.vmem [resolvable:$true] %s1041_s11 }
 0x350   :  { %s1217_s12 = scalar_lea.vmem %s1042_s11, 128  ;;  %p1222_p3 = scmp.lt.s32.totalorder %s1042_s11, %s1042_s11 }
 0x351   :  { %p1218_p2 = scmp.ne.s32.totalorder %s1042_s11, %s1217_s12  ;;  %p1223_p4 = scmp.lt.s32.totalorder %s1217_s12, %s1217_s12 }
 0x353   :  { %p1224_p5 = por %p1223_p4, %p1222_p3 }
 0x355   :  { %p1225_p6 = pnand %p1224_p5, %p1218_p2 }
 0x3fb   :  { %v503_v43 = vpop.f32.mrb[0].mxu0 }
 0x3fc   :  { %v1093_v23 = vpop.f32.mrb[1].mxu0 }
 0x3ff   :  { %v575_v24 = vpop.f32.mrb[0].mxu1 }
 0x400   :  { %v1019_v25 = vrot.slane %v575_v24, 7  ;;  %v1098_v26 = vpop.f32.mrb[1].mxu1 }
 0x402   :  { %v1020_v27 = vsel %vm150_vm0, %v1019_v25, %v503_v43 }
 0x403   :  { %v647_v28 = vpop.f32.mrb[2].mxu0 }
 0x404   :  { %v1021_v29 = vrot.slane %v647_v28, 6  ;;  %v1103_v34 = vpop.f32.mrb[3].mxu0 }
 0x406   :  { %v1022_v35 = vsel %vm152_vm1, %v1021_v29, %v1020_v27 }
 0x407   :  { %v719_v36 = vpop.f32.mrb[2].mxu1 }
 0x408   :  { %v1023_v38 = vrot.slane %v719_v36, 5  ;;  %v1108_v40 = vpop.f32.mrb[3].mxu1 }
 0x40a   :  { %v1024_v41 = vsel %vm154_vm2, %v1023_v38, %v1022_v35 }
 0x40b   :  { %v791_v42 = vpop.f32.mrb[4].mxu0 }
 0x40c   :  { %v1025_v44 = vrot.slane %v791_v42, 4  ;;  %v1113_v45 = vpop.f32.mrb[5].mxu0 }
 0x40e   :  { %v1026_v47 = vsel %vm156_vm3, %v1025_v44, %v1024_v41 }
 0x40f   :  { %v863_v49 = vpop.f32.mrb[4].mxu1 }
 0x410   :  { %v1027_v51 = vrot.slane %v863_v49, 3  ;;  %v1118_v54 = vpop.f32.mrb[5].mxu1 }
 0x412   :  { %v1028_v46 = vsel %vm158_vm4, %v1027_v51, %v1026_v47 }
 0x413   :  { %v935_v53 = vpop.f32.mrb[6].mxu0 }
 0x414   :  { %v1029_v50 = vrot.slane %v935_v53, 2  ;;  %v1123_v57 = vpop.f32.mrb[7].mxu0 }
 0x416   :  { %v1030_v58 = vsel %vm160_vm5, %v1029_v50, %v1028_v46 }
 0x417   :  { %v1007_v52 = vpop.f32.mrb[6].mxu1 }
 0x418   :  { %v1031_v61 = vrot.slane %v1007_v52, 1  ;;  %v1128_v63 = vpop.f32.mrb[7].mxu1 }
 0x41a   :  { %v1032_v1 = vsel %vm162_vm6, %v1031_v61, %v1030_v58 }
 0x41b   :  { %1034 = vst [vmem:[#allocation5] sm:$0xff] %v1032_v1 }
 0x41c   :  { %1228 = shalt.err (!%p1225_p6)
}
 0x41d   :  { %s1229_s15 = scalar_lea.hbm %s1526_s2, 128 }
 0x41e   :  { %p1230_p7 = scmp.ne.s32.totalorder %s1526_s2, %s1229_s15  ;;  %p1233_p8 = scmp.lt.u32.totalorder %s1229_s15, %s1526_s2 }
 0x420   :  { %p1235_p9 = pnand %p1233_p8, %p1230_p7 }
 0x422   :  { %1238 = shalt.err (!%p1235_p9)
}
 0x423   :  { %1044 = dma.vmem_to_hbm [thread:$0]  %s1042_s11, 128, %s1526_s2, [#allocation4]  }
 0x424   :  { %1241 = dma.done.wait [#allocation4], 128  }
 0x425   :  { %1242 = vsyncadd [#allocation4], 4294967168 }
 0x426   :  { %1243 = dma.done.wait [#allocation7], 128  }
 0x427   :  { %1244 = vsyncadd [#allocation7], 4294967168 }
 0x428   :  { %1061 = vsyncpa [#allocation3], 1 }
 0x429   :  { %1062 = vsyncpa [#allocation4], 1 }
 0x42a   :  { %1063 = vsyncpa [#allocation7], 1 }

</bundles_post_ra>
